<compile_context>
chip_gen: v7x
topology: tpu7x:2x2x1
jax: 0.10.0
libtpu: 0.0.40
codegen_flags: <defaults>
</compile_context>

<pallas_src>
import functools

import jax
import jax.numpy as jnp
import numpy as np
from jax.experimental import pallas as pl
from jax.experimental.pallas import tpu as pltpu


def _attention_kernel(dec_feat_ref, enc_ref, mask_ref, wh_ref, v_ref, *rest,
                      inv_temperature, coverage_on, compute_dtype, matmul_dtype):
    """One grid step == one block of Bb batch elements.

    Ref shapes:
      dec_feat_ref : (Bb, 1, H2)   W_s(decoder_hidden) + b_s (precomputed, compute dtype)
      enc_ref      : (Bb, Tp, H2)  encoder outputs (input dtype)
      mask_ref     : (Bb, 1, Tp)   encoder pad mask, lane-dense, f32
      wh_ref       : (H2, H2)      W_h^T (matmul dtype)
      v_ref        : (1, H2)       v (compute dtype)
      cov_ref      : (Bb, Tp, 1)   coverage, f32          (only when coverage_on)
      wc_ref       : (1, H2)       W_c^T (compute dtype)  (only when coverage_on)
      ctx_ref      : (Bb, 1, H2)   out: context vector (enc dtype)
      attn_ref     : (Bb, 1, Tp)   out: attention distribution, lane-dense f32
    """
    if coverage_on:
        cov_ref, wc_ref, ctx_ref, attn_ref = rest
    else:
        ctx_ref, attn_ref = rest

    enc = enc_ref[...]
    Bb, Tp, H2 = enc.shape
    enc_mm = enc if enc.dtype == matmul_dtype else enc.astype(matmul_dtype)

    # encoder_feature = W_h(encoder_outputs): one well-filled MXU matmul
    # (M = Bb*Tp, K = N = H2).  Tp is a multiple of 128 so the reshape is
    # layout-preserving.  NOTE: in a decoder loop this is step-invariant and can
    # be precomputed once by the caller instead of being redone every step.
    enc_feat = jnp.dot(enc_mm.reshape(Bb * Tp, H2), wh_ref[...],
                       preferred_element_type=jnp.float32).reshape(Bb, Tp, H2)

    # elementwise chain in compute dtype (bf16 on v6e/v7x with bf16 inputs).
    pre = enc_feat.astype(compute_dtype) + dec_feat_ref[...]
    if coverage_on:
        # (Bb,Tp,1) * (1,H2): coverage outer-product broadcast over the lane (H2) axis.
        pre = pre + cov_ref[...].astype(compute_dtype) * wc_ref[...]
    energy = jnp.tanh(pre)                               # EUP, compute dtype

    # scores with T on the lane axis: (Bb,1,H2) x (Bb,Tp,H2) -> (Bb,1,Tp)
    v_b = jnp.broadcast_to(v_ref[...].reshape(1, 1, H2), (Bb, 1, H2))
    scores = jnp.einsum('bqh,bth->bqt', v_b, energy,
                        preferred_element_type=jnp.float32)
    if inv_temperature != 1.0:
        scores = scores * inv_temperature

    # masked softmax over T (lane axis); softmax->mask->renorm == e*mask/sum(e*mask)
    m = jnp.max(scores, axis=-1, keepdims=True)
    e = jnp.exp(scores - m) * mask_ref[...]
    p = e / jnp.sum(e, axis=-1, keepdims=True)           # (Bb, 1, Tp), f32

    attn_ref[...] = p.astype(attn_ref.dtype)             # lane-dense store

    # context = attn @ encoder_outputs  (flash-style batched matmul)
    ctx = jnp.einsum('bqt,bth->bqh', p.astype(matmul_dtype), enc_mm,
                     preferred_element_type=jnp.float32)
    ctx_ref[...] = ctx.astype(ctx_ref.dtype)


def _device_kind():
    try:
        return jax.devices()[0].device_kind.lower()
    except Exception:
        return ""


def _pick_grid(B, T_pad, H2, enc_itemsize, coverage_on):
    """Batch-block size Bb, grid length nb, VMEM limit, bf16-VPU flag (per TPU gen)."""
    kind = _device_kind()
    is_v7 = ("v7" in kind) or ("tpu7" in kind)
    has_bf16_vpu = is_v7 or ("v6" in kind)

    # Per-pipeline-buffer budget for the streamed per-batch-row data.
    # v5e/v6e: 128 MiB VMEM -> go bigger; v7x: only 64 MiB -> stay small.
    budget = (2 if is_v7 else 6) * 1024 * 1024
    row_bytes = T_pad * H2 * enc_itemsize                 # encoder block, per batch row
    if coverage_on:
        # (Tp, 1) minor dims pad the lane axis to 128 lanes in VMEM.
        row_bytes += T_pad * 128 * 4
    bb_cap = max(1, budget // row_bytes)

    # Keep >= 4 grid steps (8 on v7x: 2 TCs x >= 4 each) so double-buffering overlaps.
    min_steps = 8 if is_v7 else 4
    nb = max(pl.cdiv(B, bb_cap), min(min_steps, B), 1)
    Bb = pl.cdiv(B, nb)
    nb = pl.cdiv(B, Bb)                   # tightest step count for this block size
    if is_v7 and nb > 1 and nb % 2:
        nb += 1                           # even split across v7x's 2 TensorCores

    vmem_limit = (48 if is_v7 else 96) * 1024 * 1024
    return int(Bb), int(nb), int(vmem_limit), has_bf16_vpu


def attention_forward(decoder_hidden, encoder_outputs, encoder_pad_mask, params,
                      coverage=None, softmax_temperature=1.0, coverage_on=True,
                      matmul_dtype=None):
    """decoder_hidden: (1, B, H2), encoder_outputs: (B, T, H2),
       encoder_pad_mask: (B, T), coverage: (B, T) or None.
       Returns (context_vector (B,H2), attention_dist (B,T), new_coverage)."""
    B, T, H2 = encoder_outputs.shape
    enc_dtype = encoder_outputs.dtype
    mm_dtype = jnp.dtype(matmul_dtype) if matmul_dtype is not None else jnp.dtype(enc_dtype)

    # ---- lane-dense T: pad to a multiple of 128 so mask / scores / attn keep T on lanes
    T_pad = int(pl.cdiv(T, 128) * 128)
    Bb, nb, vmem_limit, has_bf16_vpu = _pick_grid(
        B, T_pad, H2, jnp.dtype(enc_dtype).itemsize, coverage_on)
    B_pad = nb * Bb
    pb, pt = B_pad - B, T_pad - T

    # elementwise/tanh dtype: bf16 only where the VPU/EUP support it (v6e / v7x).
    compute_dtype = (jnp.dtype(jnp.bfloat16)
                     if (jnp.dtype(enc_dtype) == jnp.dtype(jnp.bfloat16) and has_bf16_vpu)
                     else jnp.dtype(jnp.float32))

    # ---- hoisted tiny matmul: decoder_feature = W_s(decoder_hidden) + b_s  -> (B, 1, H2)
    dec2 = decoder_hidden.reshape(B, H2).astype(jnp.float32)
    dec_feat = (dec2 @ params["W_s_w"].astype(jnp.float32).T
                + params["W_s_b"].astype(jnp.float32))
    dec_feat = dec_feat.reshape(B, 1, H2).astype(compute_dtype)

    wh_t = params["W_h"].T.astype(mm_dtype)              # (H2, H2)
    v_row = params["v"].astype(compute_dtype)            # (1, H2)

    # ---- padding.  Skipped entirely when already aligned; in a decode loop the
    # encoder-side pads (and W_h(encoder_outputs)) are step-invariant and should be
    # hoisted out of the per-step call by the caller.
    enc_p = encoder_outputs
    if pb or pt:
        enc_p = jnp.pad(enc_p, ((0, pb), (0, pt), (0, 0)))
    if pb:
        dec_feat = jnp.pad(dec_feat, ((0, pb), (0, 0), (0, 0)))

    mask_p = encoder_pad_mask.astype(jnp.float32)
    if pb or pt:
        mask_p = jnp.pad(mask_p, ((0, pb), (0, pt)))
        if pb:
            mask_p = mask_p.at[B:].set(1.0)              # keep padded batch rows NaN-free
    mask_p = mask_p.reshape(B_pad, 1, T_pad)

    batched = lambda i: (i, 0, 0)
    whole = lambda i: (0, 0)

    operands = [dec_feat, enc_p, mask_p, wh_t, v_row]
    in_specs = [
        pl.BlockSpec((Bb, 1, H2), batched),              # dec_feat
        pl.BlockSpec((Bb, T_pad, H2), batched),          # encoder outputs
        pl.BlockSpec((Bb, 1, T_pad), batched),           # pad mask (lane-dense)
        pl.BlockSpec((H2, H2), whole),                   # W_h^T
        pl.BlockSpec((1, H2), whole),                    # v
    ]
    if coverage_on:
        cov_p = coverage.astype(jnp.float32)
        if pb or pt:
            cov_p = jnp.pad(cov_p, ((0, pb), (0, pt)))
        # (B, T, 1) block: coverage must land with T on the sublane axis so it can
        # broadcast along the lane (H2) axis inside tanh; its lane-padded VMEM
        # footprint is charged to the block budget in _pick_grid.
        operands += [cov_p.reshape(B_pad, T_pad, 1),
                     params["W_c"].T.astype(compute_dtype)]
        in_specs += [pl.BlockSpec((Bb, T_pad, 1), batched),   # coverage
                     pl.BlockSpec((1, H2), whole)]            # W_c^T

    kernel = functools.partial(
        _attention_kernel,
        inv_temperature=float(1.0 / softmax_temperature),
        coverage_on=coverage_on,
        compute_dtype=compute_dtype,
        matmul_dtype=mm_dtype)

    ctx3, attn3 = pl.pallas_call(
        kernel,
        out_shape=(
            jax.ShapeDtypeStruct((B_pad, 1, H2), enc_dtype),
            jax.ShapeDtypeStruct((B_pad, 1, T_pad), jnp.float32),
        ),
        grid_spec=pltpu.PrefetchScalarGridSpec(
            num_scalar_prefetch=0,
            grid=(nb,),
            in_specs=in_specs,
            out_specs=(
                pl.BlockSpec((Bb, 1, H2), batched),
                pl.BlockSpec((Bb, 1, T_pad), batched),
            ),
        ),
        compiler_params=pltpu.CompilerParams(
            dimension_semantics=("parallel",),
            vmem_limit_bytes=vmem_limit),
    )(*operands)

    context_vector = ctx3[:B, 0, :]
    attention_dist = attn3[:B, 0, :T]
    # coverage update is a trivial elementwise add; done outside the kernel so the
    # coverage_on=False path streams no coverage input and writes no dead output.
    new_coverage = coverage + attention_dist if coverage_on else coverage
    return context_vector, attention_dist, new_coverage


def attention_reference(decoder_hidden, encoder_outputs, encoder_pad_mask, params,
                        coverage=None, softmax_temperature=1.0, coverage_on=True):
    """Pure-JAX reference mirroring the PyTorch forward exactly (f32)."""
    B, T, H2 = encoder_outputs.shape
    enc_feat = encoder_outputs @ params["W_h"].T
    dec_exp = jnp.repeat(jnp.transpose(decoder_hidden, (1, 0, 2)), T, axis=1)
    dec_feat = dec_exp @ params["W_s_w"].T + params["W_s_b"]
    if coverage_on:
        dec_feat = dec_feat + coverage[..., None] @ params["W_c"].T
    energy = jnp.tanh(enc_feat + dec_feat)
    scores = (energy @ params["v"].T)[..., 0]
    attn = jax.nn.softmax(scores / softmax_temperature, axis=-1) * encoder_pad_mask
    attn = attn / jnp.sum(attn, axis=-1, keepdims=True)
    ctx = jnp.einsum("bt,bth->bh", attn, encoder_outputs)
    new_cov = coverage + attn if coverage_on else coverage
    return ctx, attn, new_cov


if __name__ == "__main__":
    key = jax.random.PRNGKey(0)
    B, T, hidden_dim = 2, 8, 16
    H2 = 2 * hidden_dim
    keys = jax.random.split(key, 8)

    params = {
        "W_h": jax.random.normal(keys[0], (H2, H2), jnp.float32) * 0.1,
        "W_s_w": jax.random.normal(keys[1], (H2, H2), jnp.float32) * 0.1,
        "W_s_b": jax.random.normal(keys[2], (H2,), jnp.float32) * 0.1,
        "W_c": jax.random.normal(keys[3], (H2, 1), jnp.float32) * 0.1,
        "v": jax.random.normal(keys[4], (1, H2), jnp.float32) * 0.1,
    }

    decoder_hidden = jax.random.normal(keys[5], (1, B, H2), jnp.float32)
    encoder_outputs = jax.random.normal(keys[6], (B, T, H2), jnp.float32)
    lengths = jnp.array([T, T - 3])
    encoder_pad_mask = (jnp.arange(T)[None, :] < lengths[:, None]).astype(jnp.float32)
    coverage = jax.random.uniform(keys[7], (B, T), dtype=jnp.float32)

    # ---- f32, coverage-on path (strict tolerance vs the reference)
    ctx, attn, new_cov = attention_forward(
        decoder_hidden, encoder_outputs, encoder_pad_mask, params,
        coverage=coverage, softmax_temperature=1.0, coverage_on=True)
    jax.block_until_ready((ctx, attn, new_cov))
    ctx_r, attn_r, cov_r = attention_reference(
        decoder_hidden, encoder_outputs, encoder_pad_mask, params,
        coverage=coverage, softmax_temperature=1.0, coverage_on=True)
    assert np.allclose(np.asarray(ctx), np.asarray(ctx_r), rtol=1e-4, atol=1e-4), "context mismatch"
    assert np.allclose(np.asarray(attn), np.asarray(attn_r), rtol=1e-4, atol=1e-4), "attention mismatch"
    assert np.allclose(np.asarray(new_cov), np.asarray(cov_r), rtol=1e-4, atol=1e-4), "coverage mismatch"

    # ---- f32, coverage-off path (no coverage input/output streamed) + non-unit temperature
    ctx2, attn2, cov2 = attention_forward(
        decoder_hidden, encoder_outputs, encoder_pad_mask, params,
        coverage=None, softmax_temperature=2.0, coverage_on=False)
    jax.block_until_ready((ctx2, attn2))
    ctx2_r, attn2_r, _ = attention_reference(
        decoder_hidden, encoder_outputs, encoder_pad_mask, params,
        coverage=None, softmax_temperature=2.0, coverage_on=False)
    assert np.allclose(np.asarray(ctx2), np.asarray(ctx2_r), rtol=1e-4, atol=1e-4), "context mismatch (no cov)"
    assert np.allclose(np.asarray(attn2), np.asarray(attn2_r), rtol=1e-4, atol=1e-4), "attention mismatch (no cov)"
    assert cov2 is None

    # ---- bf16 inputs: exercises the bf16 MXU path (and, on v6e/v7x, the bf16
    # elementwise/tanh path).  Compared against the f32 reference with a
    # dtype-appropriate (loose) tolerance.
    enc_bf16 = encoder_outputs.astype(jnp.bfloat16)
    dec_bf16 = decoder_hidden.astype(jnp.bfloat16)
    ctx3, attn3, cov3 = attention_forward(
        dec_bf16, enc_bf16, encoder_pad_mask, params,
        coverage=coverage, softmax_temperature=1.0, coverage_on=True,
        matmul_dtype=jnp.bfloat16)
    jax.block_until_ready((ctx3, attn3, cov3))
    ctx3_r, attn3_r, cov3_r = attention_reference(
        dec_bf16.astype(jnp.float32), enc_bf16.astype(jnp.float32),
        encoder_pad_mask, params,
        coverage=coverage, softmax_temperature=1.0, coverage_on=True)
    assert np.allclose(np.asarray(ctx3.astype(jnp.float32)), np.asarray(ctx3_r),
                       rtol=5e-2, atol=5e-2), "context mismatch (bf16)"
    assert np.allclose(np.asarray(attn3), np.asarray(attn3_r),
                       rtol=5e-2, atol=5e-2), "attention mismatch (bf16)"
    assert np.allclose(np.asarray(cov3), np.asarray(cov3_r),
                       rtol=5e-2, atol=5e-2), "coverage mismatch (bf16)"

    print("KERNEL_OK")
</pallas_src>

<mosaic_0001>
module attributes {stable_mosaic.version = 11 : i64} {
  func.func @_attention_kernel(%arg0: i32, %arg1: memref<1x1x32xf32, #tpu.memory_space<vmem>>, %arg2: memref<1x128x32xf32, #tpu.memory_space<vmem>>, %arg3: memref<1x1x128xf32, #tpu.memory_space<vmem>>, %arg4: memref<32x32xf32, #tpu.memory_space<vmem>>, %arg5: memref<1x32xf32, #tpu.memory_space<vmem>>, %arg6: memref<1x128x1xf32, #tpu.memory_space<vmem>>, %arg7: memref<1x32xf32, #tpu.memory_space<vmem>>, %arg8: memref<1x1x32xf32, #tpu.memory_space<vmem>>, %arg9: memref<1x1x128xf32, #tpu.memory_space<vmem>>) attributes {dimension_semantics = [#tpu.dimension_semantics<parallel>], iteration_bounds = array<i64: 2>, scalar_prefetch = 0 : i64, scratch_operands = 0 : i64, tpu.core_type = #tpu.core_type<tc>, window_params = [{transform_indices = @transform_0, window_bounds = array<i64: 1, 1, 32>}, {transform_indices = @transform_1, window_bounds = array<i64: 1, 128, 32>}, {transform_indices = @transform_2, window_bounds = array<i64: 1, 1, 128>}, {pipeline_mode = #tpu.pipeline_mode<synchronous>, transform_indices = @transform_3, window_bounds = array<i64: 32, 32>}, {pipeline_mode = #tpu.pipeline_mode<synchronous>, transform_indices = @transform_4, window_bounds = array<i64: 1, 32>}, {transform_indices = @transform_5, window_bounds = array<i64: 1, 128, 1>}, {pipeline_mode = #tpu.pipeline_mode<synchronous>, transform_indices = @transform_6, window_bounds = array<i64: 1, 32>}, {transform_indices = @transform_7, window_bounds = array<i64: 1, 1, 32>}, {transform_indices = @transform_8, window_bounds = array<i64: 1, 1, 128>}]} {
    %c0 = arith.constant 0 : index
    %c0_0 = arith.constant 0 : index
    %c0_1 = arith.constant 0 : index
    %0 = vector.load %arg2[%c0, %c0_0, %c0_1] : memref<1x128x32xf32, #tpu.memory_space<vmem>>, vector<1x128x32xf32>
    %1 = vector.shape_cast %0 : vector<1x128x32xf32> to vector<128x32xf32>
    %c0_2 = arith.constant 0 : index
    %c0_3 = arith.constant 0 : index
    %2 = vector.load %arg4[%c0_2, %c0_3] : memref<32x32xf32, #tpu.memory_space<vmem>>, vector<32x32xf32>
    %cst = arith.constant dense<0.000000e+00> : vector<128x32xf32>
    %3 = tpu.matmul %1, %2, %cst {dimension_numbers = #tpu.dot_dimension_numbers<[1], [0], [0], [1], [0, 0, 1, 1], [], []>} : vector<128x32xf32>, vector<32x32xf32>, vector<128x32xf32> -> vector<128x32xf32>
    %4 = vector.shape_cast %3 : vector<128x32xf32> to vector<1x128x32xf32>
    %c0_4 = arith.constant 0 : index
    %c0_5 = arith.constant 0 : index
    %c0_6 = arith.constant 0 : index
    %5 = vector.load %arg1[%c0_4, %c0_5, %c0_6] : memref<1x1x32xf32, #tpu.memory_space<vmem>>, vector<1x1x32xf32>
    %6 = vector.broadcast %5 : vector<1x1x32xf32> to vector<1x128x32xf32>
    %7 = arith.addf %4, %6 : vector<1x128x32xf32>
    %c0_7 = arith.constant 0 : index
    %c0_8 = arith.constant 0 : index
    %c0_9 = arith.constant 0 : index
    %8 = vector.load %arg6[%c0_7, %c0_8, %c0_9] : memref<1x128x1xf32, #tpu.memory_space<vmem>>, vector<1x128x1xf32>
    %c0_10 = arith.constant 0 : index
    %c0_11 = arith.constant 0 : index
    %9 = vector.load %arg7[%c0_10, %c0_11] : memref<1x32xf32, #tpu.memory_space<vmem>>, vector<1x32xf32>
    %10 = vector.shape_cast %9 : vector<1x32xf32> to vector<1x1x32xf32>
    %11 = vector.broadcast %8 : vector<1x128x1xf32> to vector<1x128x32xf32>
    %12 = vector.broadcast %10 : vector<1x1x32xf32> to vector<1x128x32xf32>
    %13 = arith.mulf %11, %12 : vector<1x128x32xf32>
    %14 = arith.addf %7, %13 : vector<1x128x32xf32>
    %15 = math.tanh %14 : vector<1x128x32xf32>
    %c0_12 = arith.constant 0 : index
    %c0_13 = arith.constant 0 : index
    %16 = vector.load %arg5[%c0_12, %c0_13] : memref<1x32xf32, #tpu.memory_space<vmem>>, vector<1x32xf32>
    %17 = vector.shape_cast %16 : vector<1x32xf32> to vector<1x1x32xf32>
    "tpu.trace_start"() <{level = 10 : i32, message = "bqh,bth->bqt"}> : () -> ()
    %cst_14 = arith.constant dense<0.000000e+00> : vector<1x1x128xf32>
    %18 = tpu.matmul %17, %15, %cst_14 {dimension_numbers = #tpu.dot_dimension_numbers<[2], [2], [1], [1], [0, 0, 0, 1, 1, 1], [0], [0]>} : vector<1x1x32xf32>, vector<1x128x32xf32>, vector<1x1x128xf32> -> vector<1x1x128xf32>
    "tpu.trace_stop"() : () -> ()
    %cst_15 = arith.constant dense<0xFF800000> : vector<1x1xf32>
    %19 = vector.multi_reduction <maximumf>, %18, %cst_15 [2] : vector<1x1x128xf32> to vector<1x1xf32>
    %20 = vector.shape_cast %19 : vector<1x1xf32> to vector<1x1x1xf32>
    %21 = vector.broadcast %20 : vector<1x1x1xf32> to vector<1x1x128xf32>
    %22 = arith.subf %18, %21 : vector<1x1x128xf32>
    %23 = math.exp %22 : vector<1x1x128xf32>
    %c0_16 = arith.constant 0 : index
    %c0_17 = arith.constant 0 : index
    %c0_18 = arith.constant 0 : index
    %24 = vector.load %arg3[%c0_16, %c0_17, %c0_18] : memref<1x1x128xf32, #tpu.memory_space<vmem>>, vector<1x1x128xf32>
    %25 = arith.mulf %23, %24 : vector<1x1x128xf32>
    %cst_19 = arith.constant dense<0.000000e+00> : vector<1x1xf32>
    %26 = vector.multi_reduction <add>, %25, %cst_19 [2] : vector<1x1x128xf32> to vector<1x1xf32>
    %27 = vector.shape_cast %26 : vector<1x1xf32> to vector<1x1x1xf32>
    %28 = vector.broadcast %27 : vector<1x1x1xf32> to vector<1x1x128xf32>
    %29 = arith.divf %25, %28 : vector<1x1x128xf32>
    %c0_20 = arith.constant 0 : index
    %c0_21 = arith.constant 0 : index
    %c0_22 = arith.constant 0 : index
    %30 = vector.load %arg9[%c0_20, %c0_21, %c0_22] : memref<1x1x128xf32, #tpu.memory_space<vmem>>, vector<1x1x128xf32>
    tpu.vector_store %arg9[%c0_20, %c0_21, %c0_22], %29 {strides = array<i32>} : memref<1x1x128xf32, #tpu.memory_space<vmem>>, vector<1x1x128xf32>,
    "tpu.trace_start"() <{level = 10 : i32, message = "bqt,bth->bqh"}> : () -> ()
    %cst_23 = arith.constant dense<0.000000e+00> : vector<1x1x32xf32>
    %31 = tpu.matmul %29, %0, %cst_23 {dimension_numbers = #tpu.dot_dimension_numbers<[2], [1], [1], [2], [0, 0, 0, 1, 1, 2], [0], [0]>} : vector<1x1x128xf32>, vector<1x128x32xf32>, vector<1x1x32xf32> -> vector<1x1x32xf32>
    "tpu.trace_stop"() : () -> ()
    %c0_24 = arith.constant 0 : index
    %c0_25 = arith.constant 0 : index
    %c0_26 = arith.constant 0 : index
    %32 = vector.load %arg8[%c0_24, %c0_25, %c0_26] : memref<1x1x32xf32, #tpu.memory_space<vmem>>, vector<1x1x32xf32>
    tpu.vector_store %arg8[%c0_24, %c0_25, %c0_26], %31 {strides = array<i32>} : memref<1x1x32xf32, #tpu.memory_space<vmem>>, vector<1x1x32xf32>,
    return
  }
  func.func @transform_0(%arg0: i32) -> (i32, i32, i32) {
    %c0_i32 = arith.constant 0 : i32
    %c0_i32_0 = arith.constant 0 : i32
    %c0_i32_1 = arith.constant 0 : i32
    return %arg0, %c0_i32, %c0_i32_0 : i32, i32, i32
  }
  func.func @transform_1(%arg0: i32) -> (i32, i32, i32) {
    %c0_i32 = arith.constant 0 : i32
    %c0_i32_0 = arith.constant 0 : i32
    %c0_i32_1 = arith.constant 0 : i32
    return %arg0, %c0_i32, %c0_i32_0 : i32, i32, i32
  }
  func.func @transform_2(%arg0: i32) -> (i32, i32, i32) {
    %c0_i32 = arith.constant 0 : i32
    %c0_i32_0 = arith.constant 0 : i32
    %c0_i32_1 = arith.constant 0 : i32
    return %arg0, %c0_i32, %c0_i32_0 : i32, i32, i32
  }
  func.func @transform_3(%arg0: i32) -> (i32, i32) {
    %c0_i32 = arith.constant 0 : i32
    %c0_i32_0 = arith.constant 0 : i32
    %c0_i32_1 = arith.constant 0 : i32
    return %c0_i32, %c0_i32_0 : i32, i32
  }
  func.func @transform_4(%arg0: i32) -> (i32, i32) {
    %c0_i32 = arith.constant 0 : i32
    %c0_i32_0 = arith.constant 0 : i32
    %c0_i32_1 = arith.constant 0 : i32
    return %c0_i32, %c0_i32_0 : i32, i32
  }
  func.func @transform_5(%arg0: i32) -> (i32, i32, i32) {
    %c0_i32 = arith.constant 0 : i32
    %c0_i32_0 = arith.constant 0 : i32
    %c0_i32_1 = arith.constant 0 : i32
    return %arg0, %c0_i32, %c0_i32_0 : i32, i32, i32
  }
  func.func @transform_6(%arg0: i32) -> (i32, i32) {
    %c0_i32 = arith.constant 0 : i32
    %c0_i32_0 = arith.constant 0 : i32
    %c0_i32_1 = arith.constant 0 : i32
    return %c0_i32, %c0_i32_0 : i32, i32
  }
  func.func @transform_7(%arg0: i32) -> (i32, i32, i32) {
    %c0_i32 = arith.constant 0 : i32
    %c0_i32_0 = arith.constant 0 : i32
    %c0_i32_1 = arith.constant 0 : i32
    return %arg0, %c0_i32, %c0_i32_0 : i32, i32, i32
  }
  func.func @transform_8(%arg0: i32) -> (i32, i32, i32) {
    %c0_i32 = arith.constant 0 : i32
    %c0_i32_0 = arith.constant 0 : i32
    %c0_i32_1 = arith.constant 0 : i32
    return %arg0, %c0_i32, %c0_i32_0 : i32, i32, i32
  }
}

</mosaic_0001>

<bundles_post_ra>
// kernel: tpu_custom_call.1
= control target key start
LH: loop header
LB: loop body
LE: loop exit
PB: predicated region body
PF: predicated region fallthrough
CT: control target
= control target key end

     0   :  { %s2709_s0 = inlined_call_operand.hbm [shape: f32[2,1,32], index: 0, kind: input, shape index: {}]   ;;  %s2710_s1 = inlined_call_operand.hbm [shape: f32[2,128,32], index: 1, kind: input, shape index: {}]   ;;  %s2711_s2 = inlined_call_operand.hbm [shape: f32[2,1,128], index: 2, kind: input, shape index: {}]   ;;  %s2712_s3 = inlined_call_operand.hbm [shape: f32[32,32], index: 3, kind: input, shape index: {}]   ;;  %s2713_s4 = inlined_call_operand.hbm [shape: f32[1,32], index: 4, kind: input, shape index: {}]   ;;  %s2714_s5 = inlined_call_operand.hbm [shape: f32[2,128,1], index: 5, kind: input, shape index: {}]   ;;  %s2715_s6 = inlined_call_operand.hbm [shape: f32[1,32], index: 6, kind: input, shape index: {}]   ;;  %s2716_s7 = inlined_call_operand.hbm [shape: f32[2,1,32], index: 7, kind: output, shape index: {0}]   ;;  %s2717_s8 = inlined_call_operand.hbm [shape: f32[2,1,128], index: 8, kind: output, shape index: {1}]  }
   0x1   :  { %2741 = sst [smem:[#allocation31_spill]] %s2710_s1 }
   0x2   :  { %2742 = sst [smem:[#allocation32_spill]] %s2712_s3 }
   0x3   :  { %2743 = sst [smem:[#allocation33_spill]] %s2715_s6 }
   0x4   :  { %2744 = sst [smem:[#allocation34_spill]] %s2716_s7 }
   0x5   :  { %2745 = sst [smem:[#allocation35_spill]] %s2717_s8 }
   0x6   :  { %14 = vsyncpa [#allocation3], 0 }
   0x7   :  { %16 = vsyncpa [#allocation3 + $0x1], 0 }
   0x8   :  { %17 = vsyncpa [#allocation6], 0 }
   0x9   :  { %19 = vsyncpa [#allocation6 + $0x1], 0 }
   0xa   :  { %20 = vsyncpa [#allocation9], 0 }
   0xb   :  { %21 = vsyncpa [#allocation12], 0 }
   0xc   :  { %23 = vsyncpa [#allocation12 + $0x1], 0 }
   0xd   :  { %24 = vsyncpa [#allocation4], 0 }
   0xe   :  { %26 = vsyncpa [#allocation4 + $0x1], 0 }
   0xf   :  { %27 = vsyncpa [#allocation16], 0 }
  0x10   :  { %29 = vsyncpa [#allocation16 + $0x1], 0  ;;  %s2088_s27 = smov 0   ;;  %s2090_s28 = smov 0  }
  0x11   :  { %s2092_s29 = smov 0   ;;  %s2094_s30 = smov 0  }
  0x12 LB: > { %2746 = sst [smem:[#allocation24_spill]] %s2014_s27  ;;  %s2109_s9 = sadd.s32 4294967295, %s2026_s30   ;;  %s2026_s30 = sphi %s2094_s30, %s2791_s30   ;;  %s2022_s29 = sphi %s2092_s29, %s2793_s29   ;;  %s2018_s28 = sphi %s2090_s28, %s2795_s28   ;;  %s2014_s27 = sphi %s2088_s27, %s2794_s27  }
  0x13   : > { %2747 = sst [smem:[#allocation25_spill]] %s2022_s29  ;;  %s1286_s10 = sadd.s32 4294967294, %s2026_s30  }
  0x14   : > { %2748 = sst [smem:[#allocation26_spill]] %s2109_s9  ;;  %s2113_s11 = sadd.s32 1, %s2026_s30  }
  0x15   : > { %2749 = sst [smem:[#allocation27_spill]] %s2113_s11  ;;  %s42_s12 = sadd.s32 1, %s2022_s29 }
  0x16   : > { %s39_s13 = ssub.s32 %s2026_s30, %s2113_s11  ;;  %p49_p0 = scmp.ne.s32.totalorder %s2022_s29, %s2018_s28 }
  0x17   : > { %p40_p1 = scmp.eq.s32.totalorder %s39_s13, 0  ;;  %p50_p2 = scmp.eq.s32.totalorder %s2026_s30, 0 }
  0x18   : > { %p55_p3 = scmp.ne.s32.totalorder %s2018_s28, %s2014_s27  ;;  %p2720_p4 = scmp.eq.s32.totalorder %s2109_s9, 0 }
  0x19   : > { %s2125_s14 = scalar_select %p40_p1, %s2022_s29, %s42_s12  }
  0x1a   : > { %p2127_p5 = por %p50_p2, %p49_p0  ;;  %p2133_p6 = por %p2720_p4, %p55_p3 }
  0x1b   : > { %2750 = sst [smem:[#allocation28_spill]] %s2125_s14  ;;  %p220_p7 = scmp.eq.s32.totalorder %s2109_s9, 1 }
  0x1c   : > { %s2751_s15 = scalar_select %p2127_p5, 1, 0 }
  0x1d   : > { %s2752_s16 = scalar_select %p2133_p6, 1, 0 }
  0x1e   : > { %p226_p8 = scmp.eq.s32.totalorder %s1286_s10, 1  ;;  %p1287_p9 = scmp.ge.s32.totalorder %s2026_s30, 1 }
  0x1f   : > { %p259_p10 = scmp.lt.s32.totalorder %s2026_s30, 3  ;;  %p2140_p11 = por %p220_p7, %p49_p0 }
  0x20   : > { %p2144_p12 = por %p226_p8, %p55_p3  ;;  %s2028_s20 = smov [#allocation8]  }
  0x21   : > { %s2753_s17 = scalar_select %p2140_p11, 1, 0 }
  0x22   : > { %s2755_s18 = scalar_select %p2144_p12, 1, 0 }
  0x23   : > { %2754 = sst [smem:[#allocation29_spill]] %s2753_s17  ;;  %p2148_p13 = pnand %p1287_p9, %p259_p10 }
  0x24   : > { %2756 = sst [smem:[#allocation30_spill]] %s2755_s18  ;;  %s271_s21 = sshll.u32 %s2028_s20, 4  ;;  %s272_s21 = int_to_ptr.vmem [resolvable:$true] %s271_s21 }
  0x25   : > { %s2757_s19 = scalar_select %p2148_p13, 1, 0 }
  0x26   : > { %p1591_p1 = pneg %p2148_p13  ;;  %s2029_s23 = smov [#allocation13]  }
  0x27   : > { %s296_s24 = sshll.u32 %s2029_s23, 4  ;;  %s2759_s3 = sld [smem:[#allocation32_spill]]  ;;  %s297_s24 = int_to_ptr.vmem [resolvable:$true] %s296_s24 }
  0x28   : > { %p2156_p2 = pnand %p1591_p1, %p2720_p4 }
  0x2a   : > { %s2758_s22 = scalar_select %p2156_p2, 1, 0 }
  0x2b   : > { %p2170_p8 = pneg %p2156_p2 }
  0x2d   : > { %s1708_s10 = scalar_lea.hbm %s2759_s3, 512 }
  0x2e   : > { %p1709_p7 = scmp.ne.s32.totalorder %s2759_s3, %s1708_s10  ;;  %p1715_p1 = scmp.lt.u32.totalorder %s1708_s10, %s2759_s3 }
  0x2f   : > { %s2760_s20 = scalar_select %p2170_p8, 1, 0 }
  0x30   : > { %p1711_p9 = pnand %p2170_p8, %p1709_p7 }
  0x32   : > { %p1712_p10 = pneg %p1711_p9 }
  0x34   : > { %p1717_p0 = pnand %p1715_p1, %p1712_p10 }
  0x36   : > { %1720 = shalt.err (!%p1717_p0)
}
  0x37   : > { %s1721_s23 = scalar_lea.vmem %s272_s21, 512  ;;  %p1729_p11 = scmp.lt.s32.totalorder %s272_s21, %s272_s21 }
  0x38   : > { %p1722_p4 = scmp.ne.s32.totalorder %s272_s21, %s1721_s23  ;;  %p1730_p6 = scmp.lt.s32.totalorder %s1721_s23, %s1721_s23 }
  0x3a   : > { %p1724_p3 = pnand %p1722_p4, %p2170_p8  ;;  %p1731_p13 = por %p1730_p6, %p1729_p11 }
  0x3c   : > { %p1725_p12 = pneg %p1724_p3 }
  0x3e   : > { %p1732_p5 = pnand %p1731_p13, %p1725_p12 }
  0x40   : > { %1735 = shalt.err (!%p1732_p5)
}
  0x41   : > { %s2030_s25 = smov 128   ;;  %s2031_s26 = smov 8  }
  0x42   : > { %1594 = dma.hbm_to_vmem [thread:$0]  (!%p2156_p2), %s2759_s3, 512, %s272_s21, [#allocation9], %s2030_s25, %s2030_s25, %s2031_s26  }
  0x43   : > { %s2190_s10 = sand.u32 1, %s2022_s29   ;;  %s2761_s6 = sld [smem:[#allocation33_spill]] }
  0x49   : > { %s1736_s23 = scalar_lea.hbm %s2761_s6, 16 }
  0x4a   : > { %p1737_p4 = scmp.ne.s32.totalorder %s2761_s6, %s1736_s23  ;;  %p1743_p11 = scmp.lt.u32.totalorder %s1736_s23, %s2761_s6 }
  0x4c   : > { %p1739_p5 = pnand %p1737_p4, %p2170_p8 }
  0x4e   : > { %p1740_p6 = pneg %p1739_p5 }
  0x50   : > { %p1745_p12 = pnand %p1743_p11, %p1740_p6 }
  0x52   : > { %1748 = shalt.err (!%p1745_p12)
}
  0x53   : > { %s1749_s21 = scalar_lea.vmem %s297_s24, 16  ;;  %s1756_s11 = scalar_lea.vmem %s297_s24, 32 }
  0x54   : > { %p1750_p13 = scmp.ne.s32.totalorder %s297_s24, %s1749_s21  ;;  %p1757_p7 = scmp.lt.s32.totalorder %s297_s24, %s297_s24 }
  0x55   : > { %p1758_p9 = scmp.lt.s32.totalorder %s1756_s11, %s1749_s21 }
  0x56   : > { %p1752_p0 = pnand %p1750_p13, %p2170_p8 }
  0x57   : > { %p1759_p10 = por %p1758_p9, %p1757_p7 }
  0x58   : > { %p1753_p3 = pneg %p1752_p0 }
  0x5a   : > { %p1760_p1 = pnand %p1759_p10, %p1753_p3 }
  0x5c   : > { %1763 = shalt.err (!%p1760_p1)
}
  0x5d   : > { %1600 = dma.hbm_to_vmem [thread:$0]  (!%p2156_p2), %s2761_s6, 16, %s297_s24, [#allocation12]  }
  0x5e   : > { %p2762_p4 = scmp.ne.s32.totalorder %s2751_s15, 0  ;;  %p2763_p5 = scmp.lt.s32.totalorder %s2026_s30, 2 }
  0x5f   : > { %s2730_s8 = sand.u32 1, %s2026_s30   ;;  %s2728_s14 = sshll.u32 %s2190_s10, 7 }
  0x60   : > { %p2214_p6 = pnand %p2763_p5, %p2762_p4  ;;  %s2729_s12 = sshll.u32 %s2026_s30, 11 }
  0x61   : > { %s328_s13 = scalar_lea.vmem [#allocation5], %s2728_s14  ;;  %s2765_s1 = sld [smem:[#allocation31_spill]] }
  0x62   : > { %s2764_s7 = scalar_select %p2214_p6, 1, 0 }
  0x63   : > { %s335_s23 = sshll.u32 %s328_s13, 4  ;;  %s2234_s15 = scalar_lea.sflag [#allocation6], %s2730_s8  ;;  %s2230_s23 = int_to_ptr.vmem [resolvable:$true] %s335_s23 }
  0x64   : > { %p2240_p12 = pneg %p2214_p6 }
  0x67   : > { %s2228_s27 = scalar_lea.hbm %s2765_s1, %s2729_s12  ;;  %s1769_s11 = scalar_lea.hbm %s2765_s1, 4096 }
  0x68   : > { %s1764_s24 = scalar_lea.hbm %s2228_s27, 2048  ;;  %p1770_p3 = scmp.lt.u32.totalorder %s2228_s27, %s2765_s1 }
  0x69   : > { %p1765_p11 = scmp.ne.s32.totalorder %s2228_s27, %s1764_s24  ;;  %p1771_p7 = scmp.lt.u32.totalorder %s1769_s11, %s1764_s24 }
  0x6a   : > { %p1773_p10 = scmp.lt.u32.totalorder %s1764_s24, %s2228_s27 }
  0x6b   : > { %p1767_p13 = pnand %p2240_p12, %p1765_p11  ;;  %p1772_p9 = por %p1771_p7, %p1770_p3 }
  0x6d   : > { %p1768_p0 = pneg %p1767_p13  ;;  %p1774_p1 = por %p1773_p10, %p1772_p9 }
  0x6f   : > { %p1775_p4 = pnand %p1774_p1, %p1768_p0 }
  0x71   : > { %1778 = shalt.err (!%p1775_p4)
}
  0x72   : > { %s1779_s8 = scalar_lea.vmem %s2230_s23, 2048  ;;  %s2032_s13 = smov [#allocation5]  }
  0x73   : > { %p1780_p5 = scmp.ne.s32.totalorder %s2230_s23, %s1779_s8  ;;  %s1784_s21 = sshll.u32 %s2032_s13, 4  ;;  %s1785_s21 = int_to_ptr.vmem [resolvable:$false] %s1784_s21 }
  0x74   : > { %s1786_s14 = scalar_lea.vmem %s1785_s21, 4096  ;;  %p1787_p2 = scmp.lt.s32.totalorder %s2230_s23, %s1785_s21 }
  0x75   : > { %p1782_p11 = pnand %p1780_p5, %p2240_p12  ;;  %p1788_p8 = scmp.lt.s32.totalorder %s1786_s14, %s1779_s8 }
  0x77   : > { %p1783_p13 = pneg %p1782_p11  ;;  %p1789_p3 = por %p1788_p8, %p1787_p2 }
  0x79   : > { %p1790_p7 = pnand %p1789_p3, %p1783_p13 }
  0x7b   : > { %1793 = shalt.err (!%p1790_p7)
}
  0x7c   : > { %1607 = dma.hbm_to_vmem [thread:$0]  (!%p2214_p6), %s2228_s27, 2048, %s2230_s23, %s2234_s15, %s2030_s25, %s2030_s25, %s2031_s26  }
  0x7d   : > { %s2767_s12 = sshll.u32 %s2026_s30, 11  ;;  %s2768_s13 = sshll.u32 %s2190_s10, 7 }
  0x7e   : > { %s2272_s8 = scalar_lea.hbm %s2714_s5, %s2767_s12  ;;  %s2276_s21 = scalar_lea.vmem [#allocation11], %s2768_s13 }
  0x7f   : > { %s373_s14 = sshll.u32 %s2276_s21, 4  ;;  %s2033_s1 = smov [#allocation10]   ;;  %s2333_s14 = int_to_ptr.vmem [resolvable:$true] %s373_s14 }
  0x80   : > { %s285_s3 = sshll.u32 %s2033_s1, 4  ;;  %s1794_s17 = scalar_lea.hbm %s2713_s4, 16  ;;  %s286_s3 = int_to_ptr.vmem [resolvable:$true] %s285_s3 }
  0x81   : > { %p1795_p2 = scmp.ne.s32.totalorder %s2713_s4, %s1794_s17  ;;  %p2769_p8 = scmp.ne.s32.totalorder %s2760_s20, 0 }
  0x82   : > { %p1801_p10 = scmp.lt.u32.totalorder %s1794_s17, %s2713_s4 }
  0x83   : > { %p1797_p0 = pnand %p1795_p2, %p2769_p8 }
  0x85   : > { %p1798_p9 = pneg %p1797_p0 }
  0x87   : > { %p1803_p1 = pnand %p1801_p10, %p1798_p9 }
  0x89   : > { %1806 = shalt.err (!%p1803_p1)
}
  0x8a   : > { %s1807_s24 = scalar_lea.vmem %s286_s3, 16  ;;  %s1814_s1 = scalar_lea.vmem %s286_s3, 32 }
  0x8b   : > { %p1808_p4 = scmp.ne.s32.totalorder %s286_s3, %s1807_s24  ;;  %p1815_p13 = scmp.lt.s32.totalorder %s286_s3, %s286_s3 }
  0x8c   : > { %p1816_p3 = scmp.lt.s32.totalorder %s1814_s1, %s1807_s24 }
  0x8d   : > { %p1810_p5 = pnand %p1808_p4, %p2769_p8 }
  0x8e   : > { %p1817_p7 = por %p1816_p3, %p1815_p13 }
  0x8f   : > { %p1811_p11 = pneg %p1810_p5 }
  0x91   : > { %p1818_p6 = pnand %p1817_p7, %p1811_p11 }
  0x93   : > { %1821 = shalt.err (!%p1818_p6)
}
  0x94   : > { %p2770_p2 = scmp.ne.s32.totalorder %s2758_s22, 0  ;;  %s1292_s9 = sshll.u32 %s2026_s30, 4 }
  0x95   : > { %s310_s17 = scalar_lea.vmem [#allocation2], %s2190_s10  ;;  %s2304_s23 = scalar_lea.hbm %s2709_s0, %s1292_s9 }
  0x96   : > { %1597 = dma.hbm_to_vmem [thread:$0]  (!%p2770_p2), %s2713_s4, 16, %s286_s3, [#allocation9]  }
  0x97   : > { %s317_s20 = sshll.u32 %s310_s17, 4  ;;  %s308_s22 = scalar_lea.sflag [#allocation3], %s2190_s10  ;;  %s318_s20 = int_to_ptr.vmem [resolvable:$true] %s317_s20 }
  0x98   : > { %s1822_s27 = scalar_lea.hbm %s2304_s23, 16  ;;  %s1827_s24 = scalar_lea.hbm %s2709_s0, 32 }
  0x99   : > { %p1823_p6 = scmp.ne.s32.totalorder %s2304_s23, %s1822_s27  ;;  %p1828_p9 = scmp.lt.u32.totalorder %s2304_s23, %s2709_s0 }
  0x9a   : > { %p1829_p10 = scmp.lt.u32.totalorder %s1827_s24, %s1822_s27  ;;  %p1831_p4 = scmp.lt.u32.totalorder %s1822_s27, %s2304_s23 }
  0x9b   : > { %p1825_p8 = pnand %p1823_p6, %p2240_p12 }
  0x9c   : > { %p1830_p1 = por %p1829_p10, %p1828_p9 }
  0x9d   : > { %p1826_p0 = pneg %p1825_p8 }
  0x9e   : > { %p1832_p5 = por %p1831_p4, %p1830_p1 }
  0xa0   : > { %p1833_p11 = pnand %p1832_p5, %p1826_p0 }
  0xa2   : > { %1836 = shalt.err (!%p1833_p11)
}
  0xa3   : > { %s1837_s29 = scalar_lea.vmem %s318_s20, 16  ;;  %s2034_s17 = smov [#allocation2]  }
  0xa4   : > { %p1838_p13 = scmp.ne.s32.totalorder %s318_s20, %s1837_s29  ;;  %s1842_s11 = sshll.u32 %s2034_s17, 4  ;;  %s1843_s11 = int_to_ptr.vmem [resolvable:$false] %s1842_s11 }
  0xa5   : > { %s1844_s13 = scalar_lea.vmem %s1843_s11, 32  ;;  %p1845_p2 = scmp.lt.s32.totalorder %s318_s20, %s1843_s11 }
  0xa6   : > { %p1840_p3 = pnand %p1838_p13, %p2240_p12  ;;  %p1846_p6 = scmp.lt.s32.totalorder %s1844_s13, %s1837_s29 }
  0xa8   : > { %p1841_p7 = pneg %p1840_p3  ;;  %p1847_p8 = por %p1846_p6, %p1845_p2 }
  0xaa   : > { %p1848_p9 = pnand %p1847_p8, %p1841_p7 }
  0xac   : > { %1851 = shalt.err (!%p1848_p9)
}
  0xad   : > { %p2771_p10 = scmp.ne.s32.totalorder %s2764_s7, 0  ;;  %s2329_s12 = scalar_lea.hbm %s2711_s2, %s1292_s9 }
  0xae   : > { %s348_s24 = scalar_lea.vmem [#allocation7], %s2190_s10  ;;  %s1852_s6 = scalar_lea.hbm %s2329_s12, 16 }
  0xaf   : > { %1604 = dma.hbm_to_vmem [thread:$0]  (!%p2771_p10), %s2304_s23, 16, %s318_s20, %s308_s22  }
  0xb0   : > { %s355_s1 = sshll.u32 %s348_s24, 4  ;;  %p1853_p0 = scmp.ne.s32.totalorder %s2329_s12, %s1852_s6  ;;  %s356_s1 = int_to_ptr.vmem [resolvable:$true] %s355_s1 }
  0xb1   : > { %s1857_s9 = scalar_lea.hbm %s2711_s2, 32  ;;  %p1858_p5 = scmp.lt.u32.totalorder %s2329_s12, %s2711_s2 }
  0xb2   : > { %p1855_p1 = pnand %p1853_p0, %p2240_p12  ;;  %p1859_p11 = scmp.lt.u32.totalorder %s1857_s9, %s1852_s6 }
  0xb3   : > { %p1861_p3 = scmp.lt.u32.totalorder %s1852_s6, %s2329_s12 }
  0xb4   : > { %p1856_p4 = pneg %p1855_p1  ;;  %p1860_p13 = por %p1859_p11, %p1858_p5 }
  0xb6   : > { %p1862_p7 = por %p1861_p3, %p1860_p13 }
  0xb8   : > { %p1863_p2 = pnand %p1862_p7, %p1856_p4 }
  0xba   : > { %1866 = shalt.err (!%p1863_p2)
}
  0xbb   : > { %s1867_s10 = scalar_lea.vmem %s356_s1, 16  ;;  %s2035_s29 = smov [#allocation7]  }
  0xbc   : > { %p1868_p6 = scmp.ne.s32.totalorder %s356_s1, %s1867_s10  ;;  %s1872_s17 = sshll.u32 %s2035_s29, 4  ;;  %s1873_s17 = int_to_ptr.vmem [resolvable:$false] %s1872_s17 }
  0xbd   : > { %s1874_s11 = scalar_lea.vmem %s1873_s17, 32  ;;  %p1875_p0 = scmp.lt.s32.totalorder %s356_s1, %s1873_s17 }
  0xbe   : > { %p1870_p8 = pnand %p1868_p6, %p2240_p12  ;;  %p1876_p1 = scmp.lt.s32.totalorder %s1874_s11, %s1867_s10 }
  0xc0   : > { %p1871_p9 = pneg %p1870_p8  ;;  %p1877_p10 = por %p1876_p1, %p1875_p0 }
  0xc2   : > { %p1878_p5 = pnand %p1877_p10, %p1871_p9 }
  0xc4   : > { %1881 = shalt.err (!%p1878_p5)
}
  0xc5   : > { %p2772_p11 = scmp.ne.s32.totalorder %s2764_s7, 0  ;;  %s2773_s13 = sand.u32 1, %s2026_s30  }
  0xc6   : > { %s2356_s27 = scalar_lea.sflag [#allocation12], %s2773_s13  ;;  %s1882_s3 = scalar_lea.hbm %s2272_s8, 2048 }
  0xc7   : > { %1610 = dma.hbm_to_vmem [thread:$0]  (!%p2772_p11), %s2329_s12, 16, %s356_s1, %s2234_s15  }
  0xc8   : > { %p1883_p4 = scmp.ne.s32.totalorder %s2272_s8, %s1882_s3  ;;  %s1887_s20 = scalar_lea.hbm %s2714_s5, 4096 }
  0xc9   : > { %p1888_p3 = scmp.lt.u32.totalorder %s2272_s8, %s2714_s5  ;;  %p1889_p7 = scmp.lt.u32.totalorder %s1887_s20, %s1882_s3 }
  0xca   : > { %p1885_p13 = pnand %p1883_p4, %p2240_p12  ;;  %p1891_p6 = scmp.lt.u32.totalorder %s1882_s3, %s2272_s8 }
  0xcb   : > { %p1890_p2 = por %p1889_p7, %p1888_p3 }
  0xcc   : > { %p1886_p10 = pneg %p1885_p13 }
  0xcd   : > { %p1892_p8 = por %p1891_p6, %p1890_p2 }
  0xcf   : > { %p1893_p9 = pnand %p1892_p8, %p1886_p10 }
  0xd1   : > { %1896 = shalt.err (!%p1893_p9)
}
  0xd2   : > { %s1897_s15 = scalar_lea.vmem %s2333_s14, 2048  ;;  %s2036_s12 = smov [#allocation11]  }
  0xd3   : > { %p1898_p0 = scmp.ne.s32.totalorder %s2333_s14, %s1897_s15  ;;  %s1902_s1 = sshll.u32 %s2036_s12, 4  ;;  %s1903_s1 = int_to_ptr.vmem [resolvable:$false] %s1902_s1 }
  0xd4   : > { %s1904_s22 = scalar_lea.vmem %s1903_s1, 4096  ;;  %p1905_p4 = scmp.lt.s32.totalorder %s2333_s14, %s1903_s1 }
  0xd5   : > { %p1900_p1 = pnand %p1898_p0, %p2240_p12  ;;  %p1906_p13 = scmp.lt.s32.totalorder %s1904_s22, %s1897_s15 }
  0xd7   : > { %p1901_p5 = pneg %p1900_p1  ;;  %p1907_p3 = por %p1906_p13, %p1905_p4 }
  0xd9   : > { %p1908_p7 = pnand %p1907_p3, %p1901_p5 }
  0xdb   : > { %1911 = shalt.err (!%p1908_p7)
}
  0xdc   : > { %1613 = dma.hbm_to_vmem [thread:$0]  (!%p2772_p11), %s2272_s8, 2048, %s2333_s14, %s2356_s27, %s2030_s25, %s2030_s25, %s2031_s26  }
  0xdd   : > { %p2774_p12 = scmp.ne.s32.totalorder %s2757_s19, 0 }
  0xde   : > { %s2386_s18 = sand.u32 (!%p2774_p12), 1, %s2018_s28   ;;  %p2775_p10 = scmp.ne.s32.totalorder (!%p2774_p12), %s2752_s16, 0 }
  0xdf   : > { %385 = sbr.rel (%p2774_p12) target bundleno = 1307 (0x51b), region = 48  ;;  %s388_s21 = scalar_lea.sflag (!%p2774_p12), [#allocation3], %s2386_s18 }
  0xe0   : > { %s390_s10 = scalar_lea.vmem (!%p2774_p12), [#allocation2], %s2386_s18 }
  0xe6   : > { %1985 = dma.done.wait (%p2775_p10), %s388_s21, 16  }
  0xe7   : > { %1987 = vsyncadd (%p2775_p10), %s388_s21, 4294967280  ;;  %s2776_s7 = sld [smem:[#allocation26_spill]]  ;;  %s1301_s26 = sshll.u32 %s2386_s18, 7 }
  0xe8   : > { %s2396_s8 = scalar_lea.vmem [#allocation5], %s1301_s26 }
  0xed   : > { %s395_s25 = sand.u32 1, %s2776_s7  }
  0xee   : > { %s396_s19 = scalar_lea.sflag [#allocation6], %s395_s25 }
  0xef   : > { %1989 = dma.done.wait (%p2775_p10), %s396_s19, 2064  }
  0xf0   : > { %1991 = vsyncadd (%p2775_p10), %s396_s19, 4294965232  ;;  %s407_s14 = scalar_lea.vmem [#allocation7], %s2386_s18  ;;  %p2777_p11 = scmp.eq.s32.totalorder %s2776_s7, 0 }
  0xf2   : > { %1993 = dma.done.wait (%p2777_p11), [#allocation9], 528   ;;  %p2778_p2 = pmov %p2777_p11 }
  0xf3   : > { %s421_s29 = scalar_lea.sflag [#allocation12], %s395_s25  ;;  %s2407_s17 = scalar_lea.vmem [#allocation11], %s1301_s26 }
  0xf4   : > { %1995 = vsyncadd (%p2778_p2), [#allocation9], 4294966768 }
  0xf5   : > { %1997 = dma.done.wait (%p2775_p10), %s421_s29, 2048  }
  0xf6   : > { %1999 = vsyncadd (%p2775_p10), %s421_s29, 4294965248  ;;  %p2779_p6 = pmov %p2778_p2 }
  0xf7   : > { %p2780_p8 = pmov %p2778_p2 }
  0xf8   : > { %2001 = dma.done.wait (%p2779_p6), [#allocation12], 16  }
  0xf9   : > { %2003 = vsyncadd (%p2780_p8), [#allocation12], 4294967280  ;;  %v2037_v0 = vmov 0   ;;  %vm497_vm0 = vcmask 261120   ;;  %v493_v1 = vld [vmem:[#allocation8] sm:$0xff]  ;;  %v494_v2 = vld [vmem:[#allocation8 + $0x8] sm:$0xff] }
  0xfa   : > { %1670 = vset.pattern.permute.xlu0 %v2037_v0  ;;  %1671 = vset.pattern.permute.xlu1 %v2037_v0  ;;  %v495_v3 = vld [vmem:[#allocation8 + $0x10] sm:$0xff]  ;;  %v1503_v4 = vpack.c.bf16 %v494_v2, %v493_v1  ;;  %v496_v5 = vld [vmem:[#allocation8 + $0x18] sm:$0xff]  ;;  %v2421_v7 = vld [vmem:[%s2396_s8 + $0x8] sm:$0xff]  ;;  %v2038_v47 = vmov 0.0|0.0   ;;  %vm2039_vm1 = vmmov 0   ;;  %v2040_v48 = vmov 0.0  }
  0xfb   : > { %v2418_v6 = vld [vmem:[%s2396_s8] sm:$0xff]  ;;  %v1507_v8 = vpack.c.bf16 %v496_v5, %v495_v3  ;;  %v2428_v10 = vld [vmem:[%s2396_s8 + $0x10] sm:$0xff]  ;;  %v2431_v11 = vld [vmem:[%s2396_s8 + $0x18] sm:$0xff]  ;;  %1511 = vmatprep.subr.bf16.mxu1 %v2038_v47  ;;  %1465 = vmatprep.mubr.msk.f32.mxu1 %vm2039_vm1, %v2040_v48  ;;  %vm987_vm3 = vcmask 1040384   ;;  %s2783_s16 = sld [smem:[#allocation29_spill]]  ;;  %s476_s11 = scalar_lea.vmem [#allocation15], %s2386_s18 }
  0xfc   : > { %1409 = vmatprep.mubr.msk.f32.mxu0 %vm497_vm0, %v2418_v6  ;;  %v1544_v9 = vpack.c.bf16 %v2421_v7, %v2418_v6  ;;  %v2434_v12 = vld [vmem:[%s2396_s8 + $0x20] sm:$0xff]  ;;  %1504 = vmatprep.subr.bf16.mxu0 %v1503_v4  ;;  %v1547_v13 = vpack.c.bf16 %v2431_v11, %v2428_v10  ;;  %v2439_v14 = vld [vmem:[%s2396_s8 + $0x28] sm:$0xff]  ;;  %v2442_v15 = vld [vmem:[%s2396_s8 + $0x30] sm:$0xff]  ;;  %s1341_s13 = sshll.u32 %s2776_s7, 4  ;;  %s2784_s24 = sld [smem:[#allocation35_spill]] }
  0xfd   : > { %v2445_v16 = vld [vmem:[%s2396_s8 + $0x38] sm:$0xff]  ;;  %1506 = vmatpush3.bf16.msra.mxu0 %v1503_v4  ;;  %v1550_v17 = vpack.c.bf16 %v2439_v14, %v2434_v12  ;;  %v2452_v19 = vld [vmem:[%s2396_s8 + $0x40] sm:$0xff]  ;;  %v2455_v20 = vld [vmem:[%s2396_s8 + $0x48] sm:$0xff]  ;;  %s1104_s20 = sshll.u32 %s476_s11, 4  ;;  %s1079_s23 = scalar_lea.sflag [#allocation16], %s2386_s18  ;;  %s1105_s20 = int_to_ptr.vmem [resolvable:$true] %s1104_s20 }
  0xfe   : > { %v1553_v18 = vpack.c.bf16 %v2445_v16, %v2442_v15  ;;  %v2458_v21 = vld [vmem:[%s2396_s8 + $0x50] sm:$0xff]  ;;  %1508 = vmatprep.subr.bf16.mxu0 %v1507_v8  ;;  %v1556_v22 = vpack.c.bf16 %v2455_v20, %v2452_v19  ;;  %v2463_v23 = vld [vmem:[%s2396_s8 + $0x58] sm:$0xff]  ;;  %v2466_v24 = vld [vmem:[%s2396_s8 + $0x60] sm:$0xff]  ;;  %s1912_s9 = scalar_lea.vmem %s1105_s20, 16  ;;  %s2041_s15 = smov [#allocation15]  }
  0xff   : > { %v2469_v25 = vld [vmem:[%s2396_s8 + $0x68] sm:$0xff]  ;;  %v1559_v26 = vpack.c.bf16 %v2463_v23, %v2458_v21  ;;  %v2476_v28 = vld [vmem:[%s2396_s8 + $0x70] sm:$0xff]  ;;  %v2479_v29 = vld [vmem:[%s2396_s8 + $0x78] sm:$0xff]  ;;  %p1913_p9 = scmp.ne.s32.totalorder %s1105_s20, %s1912_s9  ;;  %s1916_s12 = sshll.u32 %s2041_s15, 4  ;;  %s1917_s12 = int_to_ptr.vmem [resolvable:$false] %s1916_s12 }
 0x100   : > { %v1562_v27 = vpack.c.bf16 %v2469_v25, %v2466_v24  ;;  %v714_v30 = vld [vmem:[%s2407_s17] sm:$0xff]  ;;  %v1565_v31 = vpack.c.bf16 %v2479_v29, %v2476_v28  ;;  %v716_v32 = vld [vmem:[%s2407_s17 + $0x10] sm:$0xff]  ;;  %v715_v33 = vld [vmem:[%s2407_s17 + $0x8] sm:$0xff]  ;;  %s1918_s1 = scalar_lea.vmem %s1917_s12, 32  ;;  %p1919_p4 = scmp.lt.s32.totalorder %s1105_s20, %s1917_s12 }
 0x101   : > { %733 = vperm.xlu0 %1670, %v714_v30   ;;  %1510 = vmatpush3.bf16.msra.mxu0 %v1507_v8  ;;  %v717_v34 = vld [vmem:[%s2407_s17 + $0x18] sm:$0xff]  ;;  %v718_v35 = vld [vmem:[%s2407_s17 + $0x20] sm:$0xff]  ;;  %v719_v36 = vld [vmem:[%s2407_s17 + $0x28] sm:$0xff]  ;;  %p2785_p0 = scmp.ne.s32.totalorder %s2783_s16, 0  ;;  %p1920_p13 = scmp.lt.s32.totalorder %s1918_s1, %s1912_s9 }
 0x102   : > { %743 = vperm.xlu1 %1671, %v716_v32   ;;  %v720_v37 = vld [vmem:[%s2407_s17 + $0x30] sm:$0xff]  ;;  %v721_v38 = vld [vmem:[%s2407_s17 + $0x38] sm:$0xff]  ;;  %v722_v39 = vld [vmem:[%s2407_s17 + $0x40] sm:$0xff]  ;;  %1543 = vmatprep.subr.bf16.mxu0 %v2038_v47  ;;  %s2639_s6 = scalar_lea.hbm %s2784_s24, %s1341_s13 }
 0x103   : > { %v723_v40 = vld [vmem:[%s2407_s17 + $0x48] sm:$0xff]  ;;  %v724_v41 = vld [vmem:[%s2407_s17 + $0x50] sm:$0xff]  ;;  %v725_v42 = vld [vmem:[%s2407_s17 + $0x58] sm:$0xff]  ;;  %p1914_p1 = pnand %p1913_p9, %p2785_p0  ;;  %p1921_p3 = por %p1920_p13, %p1919_p4 }
 0x104   : > { %1410 = vmatmul.mubr.msk.f32.vlgmr.msra.gmra.mrb[0].mxu0 %vm497_vm0, %v2421_v7  ;;  %v726_v43 = vld [vmem:[%s2407_s17 + $0x60] sm:$0xff]  ;;  %v727_v44 = vld [vmem:[%s2407_s17 + $0x68] sm:$0xff]  ;;  %v728_v45 = vld [vmem:[%s2407_s17 + $0x70] sm:$0xff] }
 0x105   : > { %738 = vperm.xlu0 %1670, %v715_v33   ;;  %1412 = vmatprep.mubr.msk.f32.mxu0 %vm497_vm0, %v2428_v10  ;;  %v729_v46 = vld [vmem:[%s2407_s17 + $0x78] sm:$0xff]  ;;  %v2562_v55 = vld [vmem:[#allocation13] ss:$0 sm:$0xff]  ;;  %vm2586_vm2 = vmpackc.low %vm497_vm0, %vm497_vm0  ;;  %p1915_p5 = pneg %p1914_p1 }
 0x106   : > { %748 = vperm.xlu1 %1671, %v717_v34   ;;  %1545 = vmatpush3.bf16.msra.mxu0 %v1544_v9  ;;  %v2566_v56 = vld [vmem:[%s390_s10] ss:$0 sm:$0xff] }
 0x107   : > { %1546 = vmatprep.subr.bf16.mxu0 %v2038_v47  ;;  %p1922_p7 = pnand %p1921_p3, %p1915_p5 }
 0x108   : > { %1413 = vmatmul.mubr.msk.f32.gmra.mrb[2].mxu0 %vm497_vm0, %v2431_v11 }
 0x109   : > { %753 = vperm.xlu0 %1670, %v718_v35   ;;  %1415 = vmatprep.mubr.msk.f32.mxu0 %vm497_vm0, %v2434_v12 }
 0x10a   : > { %758 = vperm.xlu1 %1671, %v719_v36   ;;  %1548 = vmatpush3.bf16.msra.mxu0 %v1547_v13 }
 0x10b   : > { %1549 = vmatprep.subr.bf16.mxu0 %v2038_v47 }
 0x10c   : > { %1416 = vmatmul.mubr.msk.f32.gmra.mrb[4].mxu0 %vm497_vm0, %v2439_v14 }
 0x10d   : > { %763 = vperm.xlu0 %1670, %v720_v37   ;;  %1418 = vmatprep.mubr.msk.f32.mxu0 %vm497_vm0, %v2442_v15 }
 0x10e   : > { %768 = vperm.xlu1 %1671, %v721_v38   ;;  %1551 = vmatpush3.bf16.msra.mxu0 %v1550_v17 }
 0x10f   : > { %1552 = vmatprep.subr.bf16.mxu0 %v2038_v47 }
 0x110   : > { %1419 = vmatmul.mubr.msk.f32.gmra.mrb[6].mxu0 %vm497_vm0, %v2445_v16 }
 0x111   : > { %773 = vperm.xlu0 %1670, %v722_v39   ;;  %1421 = vmatprep.mubr.msk.f32.mxu0 %vm497_vm0, %v2452_v19 }
 0x112   : > { %778 = vperm.xlu1 %1671, %v723_v40   ;;  %1554 = vmatpush3.bf16.msra.mxu0 %v1553_v18 }
 0x113   : > { %1555 = vmatprep.subr.bf16.mxu0 %v2038_v47 }
 0x114   : > { %1422 = vmatmul.mubr.msk.f32.gmra.mrb[8].mxu0 %vm497_vm0, %v2455_v20 }
 0x115   : > { %783 = vperm.xlu0 %1670, %v724_v41   ;;  %1424 = vmatprep.mubr.msk.f32.mxu0 %vm497_vm0, %v2458_v21 }
 0x116   : > { %788 = vperm.xlu1 %1671, %v725_v42   ;;  %1557 = vmatpush3.bf16.msra.mxu0 %v1556_v22 }
 0x117   : > { %1558 = vmatprep.subr.bf16.mxu0 %v2038_v47 }
 0x118   : > { %1425 = vmatmul.mubr.msk.f32.gmra.mrb[10].mxu0 %vm497_vm0, %v2463_v23 }
 0x119   : > { %793 = vperm.xlu0 %1670, %v726_v43   ;;  %1427 = vmatprep.mubr.msk.f32.mxu0 %vm497_vm0, %v2466_v24 }
 0x11a   : > { %798 = vperm.xlu1 %1671, %v727_v44   ;;  %1560 = vmatpush3.bf16.msra.mxu0 %v1559_v26 }
 0x11b   : > { %1561 = vmatprep.subr.bf16.mxu0 %v2038_v47 }
 0x11c   : > { %1428 = vmatmul.mubr.msk.f32.gmra.mrb[12].mxu0 %vm497_vm0, %v2469_v25 }
 0x11d   : > { %803 = vperm.xlu0 %1670, %v728_v45   ;;  %1430 = vmatprep.mubr.msk.f32.mxu0 %vm497_vm0, %v2476_v28 }
 0x11e   : > { %808 = vperm.xlu1 %1671, %v729_v46   ;;  %1563 = vmatpush3.bf16.msra.mxu0 %v1562_v27 }
 0x11f   : > { %1564 = vmatprep.subr.bf16.mxu0 %v2038_v47 }
 0x120   : > { %1431 = vmatmul.mubr.msk.f32.gmra.mrb[14].mxu0 %vm497_vm0, %v2479_v29 }
 0x121   : > { %1500 = vmatprep.mubr.msk.f32.mxu0 %vm2039_vm1, %v2040_v48 }
 0x122   : > { %1566 = vmatpush3.bf16.msra.mxu0 %v1565_v31 }
 0x180   : > { %v734_v50 = vpop.permute.xlu0 %733 }
 0x181   : > { %v744_v49 = vpop.permute.xlu1 %743  ;;  %v817_v61 = vmul.f32 %v2562_v55, %v734_v50 }
 0x182   : > { %v819_v3 = vmul.f32 %v2562_v55, %v744_v49 }
 0x184   : > { %v739_v52 = vpop.permute.xlu0 %738 }
 0x185   : > { %v749_v51 = vpop.permute.xlu1 %748  ;;  %v818_v58 = vmul.f32 %v2562_v55, %v739_v52 }
 0x186   : > { %v820_v0 = vmul.f32 %v2562_v55, %v749_v51 }
 0x188   : > { %v754_v54 = vpop.permute.xlu0 %753 }
 0x189   : > { %v759_v53 = vpop.permute.xlu1 %758  ;;  %v821_v17 = vmul.f32 %v2562_v55, %v754_v54 }
 0x18a   : > { %v822_v13 = vmul.f32 %v2562_v55, %v759_v53 }
 0x18c   : > { %v764_v1 = vpop.permute.xlu0 %763 }
 0x18d   : > { %v769_v62 = vpop.permute.xlu1 %768  ;;  %v823_v25 = vmul.f32 %v2562_v55, %v764_v1 }
 0x18e   : > { %v824_v22 = vmul.f32 %v2562_v55, %v769_v62 }
 0x190   : > { %v774_v14 = vpop.permute.xlu0 %773 }
 0x191   : > { %v779_v10 = vpop.permute.xlu1 %778  ;;  %v825_v39 = vmul.f32 %v2562_v55, %v774_v14 }
 0x192   : > { %v826_v35 = vmul.f32 %v2562_v55, %v779_v10 }
 0x194   : > { %v784_v29 = vpop.permute.xlu0 %783 }
 0x195   : > { %v789_v26 = vpop.permute.xlu1 %788  ;;  %v827_v53 = vmul.f32 %v2562_v55, %v784_v29  ;;  %v865_v29 = vld [vmem:[#allocation10] sm:$0x1] }
 0x196   : > { %v828_v49 = vmul.f32 %v2562_v55, %v789_v26 }
 0x198   : > { %v794_v48 = vpop.permute.xlu0 %793 }
 0x199   : > { %v799_v44 = vpop.permute.xlu1 %798 }
 0x19a   : > { %v830_v62 = vmul.f32 %v2562_v55, %v799_v44 }
 0x1d7   : > { %v1411_v57 = vpop.f32.mrb[0].mxu0 }
 0x1d8   : > { %v699_v59 = vadd.f32 %v1411_v57, %v2566_v56  ;;  %v612_v60 = vpop.f32.mrb[1].mxu0 }
 0x1d9   : > { %v698_v63 = vadd.f32 %v2566_v56, %v612_v60 }
 0x1da   : > { %v834_v2 = vadd.f32 %v818_v58, %v699_v59 }
 0x1db   : > { %v833_v4 = vadd.f32 %v817_v61, %v698_v63  ;;  %v1414_v5 = vpop.f32.mrb[2].mxu0 }
 0x1dc   : > { %1672 = vtanh.f32 %v834_v2  ;;  %v701_v6 = vadd.f32 %v1414_v5, %v2566_v56  ;;  %v622_v7 = vpop.f32.mrb[3].mxu0  ;;  %v829_v2 = vmul.f32 %v2562_v55, %v794_v48 }
 0x1dd   : > { %1674 = vtanh.f32 %v833_v4  ;;  %v700_v8 = vadd.f32 %v2566_v56, %v622_v7 }
 0x1de   : > { %v836_v9 = vadd.f32 %v820_v0, %v701_v6  ;;  %v804_v6 = vpop.permute.xlu0 %803 }
 0x1df   : > { %v835_v11 = vadd.f32 %v819_v3, %v700_v8  ;;  %v1417_v12 = vpop.f32.mrb[4].mxu0  ;;  %v809_v3 = vpop.permute.xlu1 %808 }
 0x1e0   : > { %1676 = vtanh.f32 %v836_v9  ;;  %v703_v15 = vadd.f32 %v1417_v12, %v2566_v56  ;;  %v632_v16 = vpop.f32.mrb[5].mxu0 }
 0x1e1   : > { %1678 = vtanh.f32 %v835_v11  ;;  %v702_v18 = vadd.f32 %v2566_v56, %v632_v16  ;;  %v832_v11 = vmul.f32 %v2562_v55, %v809_v3 }
 0x1e2   : > { %v838_v19 = vadd.f32 %v822_v13, %v703_v15  ;;  %v831_v15 = vmul.f32 %v2562_v55, %v804_v6 }
 0x1e3   : > { %v837_v20 = vadd.f32 %v821_v17, %v702_v18  ;;  %v1420_v21 = vpop.f32.mrb[6].mxu0 }
 0x1e4   : > { %1680 = vtanh.f32 %v838_v19  ;;  %v705_v23 = vadd.f32 %v1420_v21, %v2566_v56  ;;  %v642_v24 = vpop.f32.mrb[7].mxu0 }
 0x1e5   : > { %1682 = vtanh.f32 %v837_v20  ;;  %v704_v27 = vadd.f32 %v2566_v56, %v642_v24 }
 0x1e6   : > { %v1673_v28 = vpop.eup %1672  ;;  %v840_v30 = vadd.f32 %v824_v22, %v705_v23 }
 0x1e7   : > { %v1675_v31 = vpop.eup %1674  ;;  %v839_v32 = vadd.f32 %v823_v25, %v704_v27  ;;  %v1423_v33 = vpop.f32.mrb[8].mxu0 }
 0x1e8   : > { %1684 = vtanh.f32 %v840_v30  ;;  %v707_v36 = vadd.f32 %v1423_v33, %v2566_v56  ;;  %v652_v37 = vpop.f32.mrb[9].mxu0  ;;  %v1512_v38 = vpack.c.bf16 %v1673_v28, %v1675_v31 }
 0x1e9   : > { %1686 = vtanh.f32 %v839_v32  ;;  %v706_v40 = vadd.f32 %v2566_v56, %v652_v37 }
 0x1ea   : > { %v1677_v41 = vpop.eup %1676  ;;  %v842_v42 = vadd.f32 %v826_v35, %v707_v36  ;;  %1514 = vmatpush3.bf16.xpose.msk.msra.mxu1 %vm2586_vm2, %v1512_v38 }
 0x1eb   : > { %v1679_v43 = vpop.eup %1678  ;;  %v841_v45 = vadd.f32 %v825_v39, %v706_v40  ;;  %v1426_v46 = vpop.f32.mrb[10].mxu0  ;;  %1515 = vmatprep.subr.bf16.mxu1 %v2038_v47 }
 0x1ec   : > { %1688 = vtanh.f32 %v842_v42  ;;  %v709_v50 = vadd.f32 %v1426_v46, %v2566_v56  ;;  %v662_v51 = vpop.f32.mrb[11].mxu0  ;;  %v1516_v52 = vpack.c.bf16 %v1677_v41, %v1679_v43 }
 0x1ed   : > { %1690 = vtanh.f32 %v841_v45  ;;  %v708_v54 = vadd.f32 %v2566_v56, %v662_v51 }
 0x1ee   : > { %v1681_v57 = vpop.eup %1680  ;;  %v844_v58 = vadd.f32 %v828_v49, %v709_v50 }
 0x1ef   : > { %v1683_v59 = vpop.eup %1682  ;;  %v843_v60 = vadd.f32 %v827_v53, %v708_v54  ;;  %v1429_v61 = vpop.f32.mrb[12].mxu0 }
 0x1f0   : > { %1692 = vtanh.f32 %v844_v58  ;;  %v711_v63 = vadd.f32 %v1429_v61, %v2566_v56  ;;  %v672_v0 = vpop.f32.mrb[13].mxu0  ;;  %v1520_v1 = vpack.c.bf16 %v1681_v57, %v1683_v59 }
 0x1f1   : > { %1694 = vtanh.f32 %v843_v60  ;;  %v710_v4 = vadd.f32 %v2566_v56, %v672_v0 }
 0x1f2   : > { %v1685_v5 = vpop.eup %1684  ;;  %v846_v7 = vadd.f32 %v830_v62, %v711_v63  ;;  %1518 = vmatpush3.bf16.xpose.msk.msra.mxu1 %vm2586_vm2, %v1516_v52 }
 0x1f3   : > { %v1687_v8 = vpop.eup %1686  ;;  %v845_v9 = vadd.f32 %v829_v2, %v710_v4  ;;  %v1432_v10 = vpop.f32.mrb[14].mxu0  ;;  %1519 = vmatprep.subr.bf16.mxu1 %v2038_v47 }
 0x1f4   : > { %1696 = vtanh.f32 %v846_v7  ;;  %v713_v12 = vadd.f32 %v1432_v10, %v2566_v56  ;;  %v682_v13 = vpop.f32.mrb[15].mxu0  ;;  %v1524_v14 = vpack.c.bf16 %v1685_v5, %v1687_v8 }
 0x1f5   : > { %1698 = vtanh.f32 %v845_v9  ;;  %v712_v16 = vadd.f32 %v2566_v56, %v682_v13 }
 0x1f6   : > { %v1689_v17 = vpop.eup %1688  ;;  %v848_v18 = vadd.f32 %v832_v11, %v713_v12 }
 0x1f7   : > { %v1691_v19 = vpop.eup %1690  ;;  %v847_v20 = vadd.f32 %v831_v15, %v712_v16 }
 0x1f8   : > { %1700 = vtanh.f32 %v848_v18  ;;  %v1528_v21 = vpack.c.bf16 %v1689_v17, %v1691_v19 }
 0x1f9   : > { %1702 = vtanh.f32 %v847_v20 }
 0x1fa   : > { %v1693_v22 = vpop.eup %1692  ;;  %1522 = vmatpush3.bf16.xpose.msk.msra.mxu1 %vm2586_vm2, %v1520_v1 }
 0x1fb   : > { %v1695_v23 = vpop.eup %1694  ;;  %1523 = vmatprep.subr.bf16.mxu1 %v2038_v47 }
 0x1fc   : > { %v1532_v24 = vpack.c.bf16 %v1693_v22, %v1695_v23 }
 0x1fe   : > { %v1697_v25 = vpop.eup %1696 }
 0x1ff   : > { %v1699_v55 = vpop.eup %1698 }
 0x200   : > { %v1536_v26 = vpack.c.bf16 %v1697_v25, %v1699_v55 }
 0x202   : > { %v1701_v27 = vpop.eup %1700  ;;  %1526 = vmatpush3.bf16.xpose.msk.msra.mxu1 %vm2586_vm2, %v1524_v14 }
 0x203   : > { %v1703_v56 = vpop.eup %1702  ;;  %1527 = vmatprep.subr.bf16.mxu1 %v2038_v47 }
 0x204   : > { %v1540_v28 = vpack.c.bf16 %v1701_v27, %v1703_v56 }
 0x20a   : > { %1530 = vmatpush3.bf16.xpose.msk.msra.mxu1 %vm2586_vm2, %v1528_v21 }
 0x20b   : > { %1531 = vmatprep.subr.bf16.mxu1 %v2038_v47 }
 0x212   : > { %1534 = vmatpush3.bf16.xpose.msk.msra.mxu1 %vm2586_vm2, %v1532_v24 }
 0x213   : > { %1535 = vmatprep.subr.bf16.mxu1 %v2038_v47 }
 0x21a   : > { %1538 = vmatpush3.bf16.xpose.msk.msra.mxu1 %vm2586_vm2, %v1536_v26 }
 0x21b   : > { %1539 = vmatprep.subr.bf16.mxu1 %v2038_v47  ;;  %v994_v47 = vld [vmem:[%s407_s14] sm:$0x1] }
 0x222   : > { %1542 = vmatpush3.bf16.xpose.msk.msra.mxu1 %vm2586_vm2, %v1540_v28 }
 0x229   : > { %1466 = vmatmul.mubr.msk.f32.vlgmr.msra.gmra.mrb[0].mxu1 %vm497_vm0, %v865_v29 }
 0x2fc   : > { %v983_v30 = vpop.f32.mrb[0].mxu1 }
 0x2fd   : > { %v1467_v31 = vpop.f32.mrb[1].mxu1  ;;  %v988_v32 = vsel %vm987_vm3, %v983_v30, -inf }
 0x2fe   : > { %989 = vmax.xlane.f32.xlu0 %v988_v32 }
 0x38b   : > { %v990_v33 = vpop.xlane.xlu0 %989 }
 0x38c   : > { %v991_v35 = vsub.f32 %v983_v30, %v990_v33 }
 0x38e   : > { %v992_v36 = vmul.f32 1.442695, %v991_v35 }
 0x390   : > { %1704 = vpow2.f32 %v992_v36 }
 0x39a   : > { %v1705_v34 = vpop.eup %1704 }
 0x39b   : > { %v995_v37 = vmul.f32 %v1705_v34, %v994_v47 }
 0x39d   : > { %v996_v38 = vsel %vm987_vm3, %v995_v37, 0.0 }
 0x39e   : > { %997 = vadd.xlane.f32.xlu1 %v996_v38 }
 0x42b   : > { %v998_v39 = vpop.xlane.xlu1 %997 }
 0x42c   : > { %1706 = vrcp.f32 %v998_v39 }
 0x436   : > { %v1707_v40 = vpop.eup %1706 }
 0x437   : > { %v1000_v41 = vmul.f32 %v1707_v40, %v995_v37 }
 0x439   : > { %1501 = vmatmul.mubr.f32.vlgmr.msra.gmra.mrb[16].mxu0 %v1000_v41  ;;  %1001 = vst [vmem:[%s476_s11] sm:$0x1] %v1000_v41 }
 0x43a   : > { %1925 = shalt.err (!%p1922_p7)
}
 0x43b   : > { %s1926_s22 = scalar_lea.hbm %s2639_s6, 16  ;;  %s1930_s25 = scalar_lea.hbm %s2784_s24, 32 }
 0x43c   : > { %p1927_p12 = scmp.ne.s32.totalorder %s2639_s6, %s1926_s22  ;;  %p1931_p2 = scmp.lt.u32.totalorder %s2639_s6, %s2784_s24 }
 0x43d   : > { %p1932_p6 = scmp.lt.u32.totalorder %s1930_s25, %s1926_s22  ;;  %p1934_p9 = scmp.lt.u32.totalorder %s1926_s22, %s2639_s6 }
 0x43e   : > { %p1928_p10 = pnand %p1927_p12, %p2785_p0 }
 0x43f   : > { %p1933_p8 = por %p1932_p6, %p1931_p2 }
 0x440   : > { %p1929_p11 = pneg %p1928_p10 }
 0x441   : > { %p1935_p1 = por %p1934_p9, %p1933_p8 }
 0x443   : > { %p1936_p5 = pnand %p1935_p1, %p1929_p11 }
 0x445   : > { %1939 = shalt.err (!%p1936_p5)
}
 0x446   : > { %1588 = dma.vmem_to_hbm [thread:$0]  (%p2785_p0), %s1105_s20, 16, %s2639_s6, %s1079_s23   ;;  %vm1072_vm4 = vcmask 253952  }
 0x447   : > { %s470_s8 = scalar_lea.vmem [#allocation14], %s2386_s18  ;;  %s2786_s11 = sld [smem:[#allocation34_spill]] }
 0x448   : > { %s1091_s14 = sshll.u32 %s470_s8, 4  ;;  %s1075_s3 = scalar_lea.sflag [#allocation4], %s2386_s18  ;;  %s2667_s14 = int_to_ptr.vmem [resolvable:$true] %s1091_s14 }
 0x449   : > { %s1940_s9 = scalar_lea.vmem %s2667_s14, 16  ;;  %s2042_s7 = smov [#allocation14]  }
 0x44a   : > { %p1941_p4 = scmp.ne.s32.totalorder %s2667_s14, %s1940_s9  ;;  %s1944_s6 = sshll.u32 %s2042_s7, 4  ;;  %s1945_s6 = int_to_ptr.vmem [resolvable:$false] %s1944_s6 }
 0x44b   : > { %s1946_s20 = scalar_lea.vmem %s1945_s6, 32  ;;  %p1947_p7 = scmp.lt.s32.totalorder %s2667_s14, %s1945_s6 }
 0x44c   : > { %p1942_p13 = pnand %p1941_p4, %p2785_p0  ;;  %p1948_p12 = scmp.lt.s32.totalorder %s1946_s20, %s1940_s9 }
 0x44d   : > { %s2665_s27 = scalar_lea.hbm %s2786_s11, %s1341_s13 }
 0x44e   : > { %p1943_p3 = pneg %p1942_p13  ;;  %p1949_p10 = por %p1948_p12, %p1947_p7 }
 0x450   : > { %p1950_p11 = pnand %p1949_p10, %p1943_p3 }
 0x50c   : > { %v1068_v42 = vpop.f32.mrb[16].mxu0 }
 0x50d   : > { %1073 = vst.msk [vmem:[%s470_s8] sm:$0x1] %vm1072_vm4, %v1068_v42  ;;  %v1502_v43 = vpop.f32.mrb[17].mxu0 }
 0x50e   : > { %1953 = shalt.err (!%p1950_p11)
}
 0x50f   : > { %s1954_s18 = scalar_lea.hbm %s2665_s27, 16  ;;  %s1958_s15 = scalar_lea.hbm %s2786_s11, 32 }
 0x510   : > { %p1955_p2 = scmp.ne.s32.totalorder %s2665_s27, %s1954_s18  ;;  %p1959_p9 = scmp.lt.u32.totalorder %s2665_s27, %s2786_s11 }
 0x511   : > { %p1960_p1 = scmp.lt.u32.totalorder %s1958_s15, %s1954_s18  ;;  %p1962_p4 = scmp.lt.u32.totalorder %s1954_s18, %s2665_s27 }
 0x512   : > { %p1956_p6 = pnand %p1955_p2, %p2785_p0 }
 0x513   : > { %p1961_p5 = por %p1960_p1, %p1959_p9 }
 0x514   : > { %p1957_p8 = pneg %p1956_p6 }
 0x515   : > { %p1963_p13 = por %p1962_p4, %p1961_p5 }
 0x517   : > { %p1964_p3 = pnand %p1963_p13, %p1957_p8 }
 0x519   : > { %1967 = shalt.err (!%p1964_p3)
}
 0x51a   : > { %1587 = dma.vmem_to_hbm [thread:$0]  (%p2785_p0), %s2667_s14, 16, %s2665_s27, %s1075_s3  }
 0x51b PF: > { %s2787_s22 = sld [smem:[#allocation24_spill]]  ;;  %s2788_s21 = sld [smem:[#allocation30_spill]] }
 0x51c   : > { %p2790_p12 = scmp.ge.s32.totalorder %s2026_s30, 2 }
 0x521   : > { %s1116_s10 = sand.u32 1, %s2787_s22   ;;  %p2789_p7 = scmp.ne.s32.totalorder %s2788_s21, 0 }
 0x522   : > { %s1117_s25 = scalar_lea.sflag [#allocation4], %s1116_s10 }
 0x523   : > { %p1615_p10 = pnand %p2790_p12, %p2789_p7 }
 0x525   : > { %2005 = dma.done.wait (!%p1615_p10), %s1117_s25, 16  }
 0x526   : > { %2007 = vsyncadd (!%p1615_p10), %s1117_s25, 4294967280  ;;  %s1125_s26 = scalar_lea.sflag [#allocation16], %s1116_s10 }
 0x527   : > { %2009 = dma.done.wait (!%p1615_p10), %s1125_s26, 16  }
 0x528   : > { %2011 = vsyncadd (!%p1615_p10), %s1125_s26, 4294967280  ;;  %s2791_s30 = sld [smem:[#allocation27_spill]]  ;;  %s2792_s16 = sld [smem:[#allocation25_spill]] }
 0x529   : > { %s2793_s29 = sld [smem:[#allocation28_spill]]  ;;  %s2794_s27 = smov %s2018_s28 }
 0x52e   : > { %p32_p0 = scmp.ge.s32.totalorder %s2791_s30, 4   ;;  %s2795_s28 = smov %s2792_s16 }
 0x530   :  { %34 = sbr.rel (!%p32_p0) target bundleno = 18 (0x12), region = 159 }
 0x537   :  { %1129 = vsyncpa [#allocation3], 1 }
 0x538   :  { %1131 = vsyncpa [#allocation3 + $0x1], 1 }
 0x539   :  { %1132 = vsyncpa [#allocation6], 1 }
 0x53a   :  { %1134 = vsyncpa [#allocation6 + $0x1], 1 }
 0x53b   :  { %1135 = vsyncpa [#allocation9], 1 }
 0x53c   :  { %1136 = vsyncpa [#allocation12], 1 }
 0x53d   :  { %1138 = vsyncpa [#allocation12 + $0x1], 1 }
 0x53e   :  { %1139 = vsyncpa [#allocation4], 1 }
 0x53f   :  { %1141 = vsyncpa [#allocation4 + $0x1], 1 }
 0x540   :  { %1142 = vsyncpa [#allocation16], 1 }
 0x541   :  { %1144 = vsyncpa [#allocation16 + $0x1], 1 }

</bundles_post_ra>
